<compile_context>
chip_gen: v6e
topology: v6e:2x2x1
jax: 0.10.0
libtpu: 0.0.40
codegen_flags: <defaults>
</compile_context>

<pallas_src>
import functools

import jax
import jax.numpy as jnp
from jax.experimental import pallas as pl
from jax.experimental.pallas import tpu as pltpu


# ------------------------------------------------------------------ utilities
def _cdiv(a, b):
    return -(-a // b)


def _round_up(a, b):
    return _cdiv(a, b) * b


def _recip(x):
    """EUP approximate reciprocal + one Newton step (~f32 accuracy)."""
    r = pl.reciprocal(x, approx=True)
    return r * (2.0 - x * r)


# ----------------------------------------------- lane-rotation convention probe
def _roll_probe_kernel(o_ref):
    lane = jax.lax.broadcasted_iota(jnp.int32, (8, 128), 1)
    o_ref[...] = pltpu.roll(lane, shift=1, axis=-1)


@functools.lru_cache(maxsize=1)
def _roll_mode():
    """Detect pltpu.roll's shift convention once (eagerly, cached).

    Returns "np"     : result[l] = x[l - shift]   (numpy convention)
            "pos"    : result[l] = x[l + shift]
            "concat" : pltpu.roll unavailable -> slice+concatenate fallback.
    """
    try:
        out = pl.pallas_call(
            _roll_probe_kernel,
            out_shape=jax.ShapeDtypeStruct((8, 128), jnp.int32),
        )()
        v = int(jax.device_get(out)[0, 0])
    except Exception:
        return "concat"
    return "pos" if v == 1 else "np"


def _shift_down(v, k, mode):
    """w[..., l] = v[..., (l + k) % L] — align a box's hi coords with its lo coords."""
    L = v.shape[-1]
    if mode == "concat":
        return jnp.concatenate([v[:, k:], v[:, :k]], axis=-1)
    shift = (L - k) if mode == "np" else k
    return pltpu.roll(v, shift=shift, axis=-1)


# --------------------------------------------------------------------- kernel
MAX_TILE_SUB = 512        # rows of 128 boxes per tile -> (512, 512) f32 = 1 MiB/input
_PALLAS_MIN_N = 2048      # below this the fused XLA path beats pallas_call overhead
_LANES = 512              # 128 boxes * 4 interleaved coords per row


def _make_giou_kernel(roll_mode):
    def kernel(a_ref, b_ref, out_ref):
        k = pl.program_id(0)

        @pl.when(k == 0)
        def _init():
            out_ref[...] = jnp.zeros_like(out_ref)

        # (S, 512) tiles, lanes cycle [x1, y1, x2, y2] per box (period 4).
        a = a_ref[...]
        b = b_ref[...]
        s = a.shape[0]

        mn = jnp.minimum(a, b)   # lane c: 0=cxmin 1=cymin 2=xmax_i 3=ymax_i
        mx = jnp.maximum(a, b)   # lane c: 0=xmin_i 1=ymin_i 2=cxmax 3=cymax

        # Intersection width/height land at lanes c==0 / c==1.
        wh_i = jnp.maximum(_shift_down(mn, 2, roll_mode) - mx + 1.0, 0.0)
        cross = wh_i * _shift_down(wh_i, 1, roll_mode)            # valid at c==0

        # Per-box side lengths (c==0: width, c==1: height) and areas (c==0).
        da = _shift_down(a, 2, roll_mode) - a + 1.0
        db = _shift_down(b, 2, roll_mode) - b + 1.0
        area_a = da * _shift_down(da, 1, roll_mode)
        area_b = db * _shift_down(db, 1, roll_mode)
        union = area_a + area_b - cross                           # valid at c==0

        # Enclosing box.
        wh_c = _shift_down(mx, 2, roll_mode) - mn + 1.0
        cbox = wh_c * _shift_down(wh_c, 1, roll_mode)             # valid at c==0

        # 1 - (iou - (c - union)/c)  ==  2 - cross/union - union/c
        term = 2.0 - cross * _recip(union) - union * _recip(cbox)

        # Only lanes with c==0 hold real boxes; zero the rest (kills any
        # inf/nan produced by the approx reciprocal in the garbage lanes).
        lane = jax.lax.broadcasted_iota(jnp.int32, (s, _LANES), 1)
        term = jnp.where((lane & 3) == 0, term, 0.0)

        # Aligned (8, 512) vreg adds into the resident output accumulator.
        out_ref[...] += term.reshape(s // 8, 8, _LANES).sum(axis=0)

    return kernel


# -------------------------------------------------------------------- wrapper
def giou_loss_ref(A, B):
    """Pure-JAX reference mirroring the PyTorch forward (also the small-N path)."""
    A = A.astype(jnp.float32)
    B = B.astype(jnp.float32)
    ax, ay, ar, ab = A[:, 0], A[:, 1], A[:, 2], A[:, 3]
    bx, by, br, bb = B[:, 0], B[:, 1], B[:, 2], B[:, 3]
    cw = jnp.clip(jnp.minimum(ar, br) - jnp.maximum(ax, bx) + 1, 0)
    ch = jnp.clip(jnp.minimum(ab, bb) - jnp.maximum(ay, by) + 1, 0)
    cross = cw * ch
    union = (ar - ax + 1) * (ab - ay + 1) + (br - bx + 1) * (bb - by + 1) - cross
    iou = cross / union
    c = (jnp.maximum(ar, br) - jnp.minimum(ax, bx) + 1) * \
        (jnp.maximum(ab, bb) - jnp.minimum(ay, by) + 1)
    return (1 - (iou - (c - union) / c)).sum() / A.shape[0]


def _stage(X, boxes_pad):
    """(N, 4) -> (boxes_pad // 128, 512), coords interleaved along lanes.

    Free (bitcast) reshape when no padding is needed; otherwise one contiguous
    pad+reshape copy.  Zero padding contributes exactly 0 to the loss sum.
    """
    n = X.shape[0]
    Xf = X.astype(jnp.float32)
    if boxes_pad != n:
        Xf = jnp.pad(Xf, ((0, boxes_pad - n), (0, 0)))
    return Xf.reshape(boxes_pad // 128, _LANES)


def giou_loss(A, B, force_pallas=False):
    """A, B: (N, 4) arrays of [x1, y1, x2, y2] boxes. Returns mean GIoU loss."""
    N = A.shape[0]
    if N == 0:
        # Note: the torch module returns torch.tensor([0]); we return a scalar
        # for rank/dtype consistency with the other dispatch paths.
        return jnp.zeros((), jnp.float32)

    if N < _PALLAS_MIN_N and not force_pallas:
        return giou_loss_ref(A, B)

    rows = _cdiv(N, 128)
    num_tiles = max(1, _cdiv(rows, MAX_TILE_SUB))
    tile_sub = max(8, _round_up(_cdiv(rows, num_tiles), 8))   # <= MAX_TILE_SUB
    rows_pad = num_tiles * tile_sub                            # tiny over-read
    boxes_pad = rows_pad * 128

    A2 = _stage(A, boxes_pad)
    B2 = _stage(B, boxes_pad)

    # Explicit VMEM budget: 2 inputs x 2 pipeline buffers + headroom for the
    # elementwise temporaries Mosaic may materialize.  Stays within every
    # generation's physical VMEM (v7x: 64 MiB).
    tile_bytes = tile_sub * _LANES * 4
    vmem_limit = int(min(48 << 20, max(32 << 20, 28 * tile_bytes + (2 << 20))))

    out = pl.pallas_call(
        _make_giou_kernel(_roll_mode()),
        out_shape=jax.ShapeDtypeStruct((8, _LANES), jnp.float32),
        grid=(num_tiles,),
        in_specs=[
            pl.BlockSpec((tile_sub, _LANES), lambda k: (k, 0)),
            pl.BlockSpec((tile_sub, _LANES), lambda k: (k, 0)),
        ],
        out_specs=pl.BlockSpec((8, _LANES), lambda k: (0, 0)),
        compiler_params=pltpu.CompilerParams(
            dimension_semantics=("arbitrary",),
            vmem_limit_bytes=vmem_limit),
    )(A2, B2)

    # Single cross-lane/sublane reduce + 1/N fold, outside the hot loop.
    return jnp.sum(out) * (1.0 / N)


# ----------------------------------------------------------------------- main
def _make_boxes(key, n):
    k1, k2 = jax.random.split(key)
    xy = jax.random.uniform(k1, (n, 2), minval=0.0, maxval=50.0)
    wh = jax.random.uniform(k2, (n, 2), minval=1.0, maxval=30.0)
    return jnp.concatenate([xy, xy + wh], axis=1)          # (n, 4), x2>=x1, y2>=y1


if __name__ == "__main__":
    key = jax.random.PRNGKey(0)
    ka, kb, kc, kd, ke, kf = jax.random.split(key, 6)

    # Case 1: small N, non-multiple of 128 — force the Pallas path to exercise
    # zero-padding of the lane slab with a single tiny tile.
    N1 = 37
    A1, B1 = _make_boxes(ka, N1), _make_boxes(kb, N1)
    out1 = jax.block_until_ready(giou_loss(A1, B1, force_pallas=True))
    ref1 = giou_loss_ref(A1, B1)
    assert jnp.allclose(out1, ref1, rtol=1e-4, atol=1e-4), (out1, ref1)

    # Case 2: small N, default dispatch (pure-JAX fast path).
    out1b = jax.block_until_ready(giou_loss(A1, B1))
    assert jnp.allclose(out1b, ref1, rtol=1e-5, atol=1e-5), (out1b, ref1)

    # Case 3: larger N, not a multiple of 128 — multiple tiles + minimal padding
    # + cross-tile accumulation into the resident output block.
    N2 = 70000
    A2, B2 = _make_boxes(kc, N2), _make_boxes(kd, N2)
    out2 = jax.block_until_ready(giou_loss(A2, B2))
    ref2 = giou_loss_ref(A2, B2)
    assert jnp.allclose(out2, ref2, rtol=1e-4, atol=1e-4), (out2, ref2)

    # Case 4: N exactly tileable (512 rows * 128 boxes) — zero-copy staging path.
    N3 = 65536
    A3, B3 = _make_boxes(ke, N3), _make_boxes(kf, N3)
    out3 = jax.block_until_ready(giou_loss(A3, B3))
    ref3 = giou_loss_ref(A3, B3)
    assert jnp.allclose(out3, ref3, rtol=1e-4, atol=1e-4), (out3, ref3)

    print("KERNEL_OK")
</pallas_src>

<mosaic_0001>
module attributes {stable_mosaic.version = 11 : i64} {
  func.func @kernel(%arg0: i32, %arg1: memref<8x512xf32, #tpu.memory_space<vmem>>, %arg2: memref<8x512xf32, #tpu.memory_space<vmem>>, %arg3: memref<8x512xf32, #tpu.memory_space<vmem>>) attributes {dimension_semantics = [#tpu.dimension_semantics<arbitrary>], iteration_bounds = array<i64: 1>, scalar_prefetch = 0 : i64, scratch_operands = 0 : i64, tpu.core_type = #tpu.core_type<tc>, window_params = [{transform_indices = @transform_0, window_bounds = array<i64: 8, 512>}, {transform_indices = @transform_1, window_bounds = array<i64: 8, 512>}, {pipeline_mode = #tpu.pipeline_mode<synchronous>, transform_indices = @transform_2, window_bounds = array<i64: 8, 512>}]} {
    %c0_i32 = arith.constant 0 : i32
    %0 = arith.cmpi eq, %arg0, %c0_i32 : i32
    %1 = arith.extui %0 : i1 to i32
    %c0_i32_0 = arith.constant 0 : i32
    %2 = arith.cmpi ne, %1, %c0_i32_0 : i32
    scf.if %2 {
      %cst_18 = arith.constant 0.000000e+00 : f32
      %78 = vector.broadcast %cst_18 : f32 to vector<8x512xf32>
      %c0_19 = arith.constant 0 : index
      %c0_20 = arith.constant 0 : index
      %79 = vector.load %arg3[%c0_19, %c0_20] : memref<8x512xf32, #tpu.memory_space<vmem>>, vector<8x512xf32>
      tpu.vector_store %arg3[%c0_19, %c0_20], %78 {strides = array<i32>} : memref<8x512xf32, #tpu.memory_space<vmem>>, vector<8x512xf32>,
    } else {
    }
    %c0 = arith.constant 0 : index
    %c0_1 = arith.constant 0 : index
    %3 = vector.load %arg1[%c0, %c0_1] : memref<8x512xf32, #tpu.memory_space<vmem>>, vector<8x512xf32>
    %c0_2 = arith.constant 0 : index
    %c0_3 = arith.constant 0 : index
    %4 = vector.load %arg2[%c0_2, %c0_3] : memref<8x512xf32, #tpu.memory_space<vmem>>, vector<8x512xf32>
    %5 = arith.minimumf %3, %4 : vector<8x512xf32>
    %6 = arith.maximumf %3, %4 : vector<8x512xf32>
    %7 = vector.extract_strided_slice %5 {offsets = [0, 2], sizes = [8, 510], strides = [1, 1]} : vector<8x512xf32> to vector<8x510xf32>
    %8 = vector.extract_strided_slice %5 {offsets = [0, 0], sizes = [8, 2], strides = [1, 1]} : vector<8x512xf32> to vector<8x2xf32>
    %9 = tpu.concatenate %7, %8 in 1 : vector<8x510xf32>, vector<8x2xf32> -> vector<8x512xf32>
    %10 = arith.subf %9, %6 : vector<8x512xf32>
    %cst = arith.constant 1.000000e+00 : f32
    %11 = vector.broadcast %cst : f32 to vector<8x512xf32>
    %12 = arith.addf %10, %11 : vector<8x512xf32>
    %cst_4 = arith.constant 0.000000e+00 : f32
    %13 = vector.broadcast %cst_4 : f32 to vector<8x512xf32>
    %14 = arith.maximumf %12, %13 : vector<8x512xf32>
    %15 = vector.extract_strided_slice %14 {offsets = [0, 1], sizes = [8, 511], strides = [1, 1]} : vector<8x512xf32> to vector<8x511xf32>
    %16 = vector.extract_strided_slice %14 {offsets = [0, 0], sizes = [8, 1], strides = [1, 1]} : vector<8x512xf32> to vector<8x1xf32>
    %17 = tpu.concatenate %15, %16 in 1 : vector<8x511xf32>, vector<8x1xf32> -> vector<8x512xf32>
    %18 = arith.mulf %14, %17 : vector<8x512xf32>
    %19 = vector.extract_strided_slice %3 {offsets = [0, 2], sizes = [8, 510], strides = [1, 1]} : vector<8x512xf32> to vector<8x510xf32>
    %20 = vector.extract_strided_slice %3 {offsets = [0, 0], sizes = [8, 2], strides = [1, 1]} : vector<8x512xf32> to vector<8x2xf32>
    %21 = tpu.concatenate %19, %20 in 1 : vector<8x510xf32>, vector<8x2xf32> -> vector<8x512xf32>
    %22 = arith.subf %21, %3 : vector<8x512xf32>
    %cst_5 = arith.constant 1.000000e+00 : f32
    %23 = vector.broadcast %cst_5 : f32 to vector<8x512xf32>
    %24 = arith.addf %22, %23 : vector<8x512xf32>
    %25 = vector.extract_strided_slice %4 {offsets = [0, 2], sizes = [8, 510], strides = [1, 1]} : vector<8x512xf32> to vector<8x510xf32>
    %26 = vector.extract_strided_slice %4 {offsets = [0, 0], sizes = [8, 2], strides = [1, 1]} : vector<8x512xf32> to vector<8x2xf32>
    %27 = tpu.concatenate %25, %26 in 1 : vector<8x510xf32>, vector<8x2xf32> -> vector<8x512xf32>
    %28 = arith.subf %27, %4 : vector<8x512xf32>
    %cst_6 = arith.constant 1.000000e+00 : f32
    %29 = vector.broadcast %cst_6 : f32 to vector<8x512xf32>
    %30 = arith.addf %28, %29 : vector<8x512xf32>
    %31 = vector.extract_strided_slice %24 {offsets = [0, 1], sizes = [8, 511], strides = [1, 1]} : vector<8x512xf32> to vector<8x511xf32>
    %32 = vector.extract_strided_slice %24 {offsets = [0, 0], sizes = [8, 1], strides = [1, 1]} : vector<8x512xf32> to vector<8x1xf32>
    %33 = tpu.concatenate %31, %32 in 1 : vector<8x511xf32>, vector<8x1xf32> -> vector<8x512xf32>
    %34 = arith.mulf %24, %33 : vector<8x512xf32>
    %35 = vector.extract_strided_slice %30 {offsets = [0, 1], sizes = [8, 511], strides = [1, 1]} : vector<8x512xf32> to vector<8x511xf32>
    %36 = vector.extract_strided_slice %30 {offsets = [0, 0], sizes = [8, 1], strides = [1, 1]} : vector<8x512xf32> to vector<8x1xf32>
    %37 = tpu.concatenate %35, %36 in 1 : vector<8x511xf32>, vector<8x1xf32> -> vector<8x512xf32>
    %38 = arith.mulf %30, %37 : vector<8x512xf32>
    %39 = arith.addf %34, %38 : vector<8x512xf32>
    %40 = arith.subf %39, %18 : vector<8x512xf32>
    %41 = vector.extract_strided_slice %6 {offsets = [0, 2], sizes = [8, 510], strides = [1, 1]} : vector<8x512xf32> to vector<8x510xf32>
    %42 = vector.extract_strided_slice %6 {offsets = [0, 0], sizes = [8, 2], strides = [1, 1]} : vector<8x512xf32> to vector<8x2xf32>
    %43 = tpu.concatenate %41, %42 in 1 : vector<8x510xf32>, vector<8x2xf32> -> vector<8x512xf32>
    %44 = arith.subf %43, %5 : vector<8x512xf32>
    %cst_7 = arith.constant 1.000000e+00 : f32
    %45 = vector.broadcast %cst_7 : f32 to vector<8x512xf32>
    %46 = arith.addf %44, %45 : vector<8x512xf32>
    %47 = vector.extract_strided_slice %46 {offsets = [0, 1], sizes = [8, 511], strides = [1, 1]} : vector<8x512xf32> to vector<8x511xf32>
    %48 = vector.extract_strided_slice %46 {offsets = [0, 0], sizes = [8, 1], strides = [1, 1]} : vector<8x512xf32> to vector<8x1xf32>
    %49 = tpu.concatenate %47, %48 in 1 : vector<8x511xf32>, vector<8x1xf32> -> vector<8x512xf32>
    %50 = arith.mulf %46, %49 : vector<8x512xf32>
    %51 = tpu.reciprocal %40 {approx = true} : vector<8x512xf32> -> vector<8x512xf32>
    %52 = arith.mulf %40, %51 : vector<8x512xf32>
    %cst_8 = arith.constant 2.000000e+00 : f32
    %53 = vector.broadcast %cst_8 : f32 to vector<8x512xf32>
    %54 = arith.subf %53, %52 : vector<8x512xf32>
    %55 = arith.mulf %51, %54 : vector<8x512xf32>
    %56 = arith.mulf %18, %55 : vector<8x512xf32>
    %cst_9 = arith.constant 2.000000e+00 : f32
    %57 = vector.broadcast %cst_9 : f32 to vector<8x512xf32>
    %58 = arith.subf %57, %56 : vector<8x512xf32>
    %59 = tpu.reciprocal %50 {approx = true} : vector<8x512xf32> -> vector<8x512xf32>
    %60 = arith.mulf %50, %59 : vector<8x512xf32>
    %cst_10 = arith.constant 2.000000e+00 : f32
    %61 = vector.broadcast %cst_10 : f32 to vector<8x512xf32>
    %62 = arith.subf %61, %60 : vector<8x512xf32>
    %63 = arith.mulf %59, %62 : vector<8x512xf32>
    %64 = arith.mulf %40, %63 : vector<8x512xf32>
    %65 = arith.subf %58, %64 : vector<8x512xf32>
    %66 = tpu.iota {dimensions = array<i32: 1>} : vector<8x512xi32>
    %c3_i32 = arith.constant 3 : i32
    %67 = vector.broadcast %c3_i32 : i32 to vector<8x512xi32>
    %68 = arith.andi %66, %67 : vector<8x512xi32>
    %c0_i32_11 = arith.constant 0 : i32
    %69 = vector.broadcast %c0_i32_11 : i32 to vector<8x512xi32>
    %70 = arith.cmpi eq, %68, %69 : vector<8x512xi32>
    %cst_12 = arith.constant 0.000000e+00 : f32
    %71 = vector.broadcast %cst_12 : f32 to vector<8x512xf32>
    %72 = arith.select %70, %65, %71 : vector<8x512xi1>, vector<8x512xf32>
    %c0_13 = arith.constant 0 : index
    %c0_14 = arith.constant 0 : index
    %73 = vector.load %arg3[%c0_13, %c0_14] : memref<8x512xf32, #tpu.memory_space<vmem>>, vector<8x512xf32>
    %74 = vector.shape_cast %72 : vector<8x512xf32> to vector<1x8x512xf32>
    %cst_15 = arith.constant dense<0.000000e+00> : vector<8x512xf32>
    %75 = vector.multi_reduction <add>, %74, %cst_15 [0] : vector<1x8x512xf32> to vector<8x512xf32>
    %76 = arith.addf %73, %75 : vector<8x512xf32>
    %c0_16 = arith.constant 0 : index
    %c0_17 = arith.constant 0 : index
    %77 = vector.load %arg3[%c0_16, %c0_17] : memref<8x512xf32, #tpu.memory_space<vmem>>, vector<8x512xf32>
    tpu.vector_store %arg3[%c0_16, %c0_17], %76 {strides = array<i32>} : memref<8x512xf32, #tpu.memory_space<vmem>>, vector<8x512xf32>,
    return
  }
  func.func @transform_0(%arg0: i32) -> (i32, i32) {
    %c0_i32 = arith.constant 0 : i32
    %c0_i32_0 = arith.constant 0 : i32
    return %arg0, %c0_i32 : i32, i32
  }
  func.func @transform_1(%arg0: i32) -> (i32, i32) {
    %c0_i32 = arith.constant 0 : i32
    %c0_i32_0 = arith.constant 0 : i32
    return %arg0, %c0_i32 : i32, i32
  }
  func.func @transform_2(%arg0: i32) -> (i32, i32) {
    %c0_i32 = arith.constant 0 : i32
    %c0_i32_0 = arith.constant 0 : i32
    %c0_i32_1 = arith.constant 0 : i32
    return %c0_i32, %c0_i32_0 : i32, i32
  }
}

</mosaic_0001>

<bundles_post_ra>
// kernel: tpu_custom_call.1
= control target key start
LH: loop header
LB: loop body
LE: loop exit
PB: predicated region body
PF: predicated region fallthrough
CT: control target
= control target key end

     0   :  { %7 = vsyncpa [#allocation3], 0  ;;  %s684_s0 = inlined_call_operand.hbm [shape: f32[8,512], index: 0, kind: input, shape index: {}]   ;;  %s685_s1 = inlined_call_operand.hbm [shape: f32[8,512], index: 1, kind: input, shape index: {}]   ;;  %s686_s2 = inlined_call_operand.hbm [shape: f32[8,512], index: 2, kind: output, shape index: {}]  }
   0x1   :  { %8 = vsyncpa [#allocation6], 0 }
   0x2   :  { %9 = vsyncpa [#allocation4], 0  ;;  %s475_s9 = smov [#allocation2]   ;;  %s476_s11 = smov [#allocation5]  }
   0x3   :  { %s16_s10 = sshll.u32 %s475_s9, 4  ;;  %s26_s12 = sshll.u32 %s476_s11, 4  ;;  %s17_s10 = int_to_ptr.vmem [resolvable:$true] %s16_s10  ;;  %s27_s12 = int_to_ptr.vmem [resolvable:$true] %s26_s12 }
   0x4   :  { %s417_s13 = scalar_lea.vmem %s17_s10, 512  ;;  %p422_p1 = scmp.lt.s32.totalorder %s17_s10, %s17_s10 }
   0x5   :  { %p418_p0 = scmp.ne.s32.totalorder %s17_s10, %s417_s13  ;;  %p423_p2 = scmp.lt.s32.totalorder %s417_s13, %s417_s13 }
   0x7   :  { %p424_p3 = por %p423_p2, %p422_p1 }
   0x9   :  { %p425_p4 = pnand %p424_p3, %p418_p0 }
   0xb   :  { %428 = shalt.err (!%p425_p4)
}
   0xc   :  { %19 = dma.hbm_to_vmem [thread:$0]  %s684_s0, 512, %s17_s10, [#allocation3]  }
   0xd   :  { %s437_s16 = scalar_lea.vmem %s27_s12, 512  ;;  %p442_p6 = scmp.lt.s32.totalorder %s27_s12, %s27_s12 }
   0xe   :  { %p438_p5 = scmp.ne.s32.totalorder %s27_s12, %s437_s16  ;;  %p443_p7 = scmp.lt.s32.totalorder %s437_s16, %s437_s16 }
  0x10   :  { %p444_p8 = por %p443_p7, %p442_p6 }
  0x12   :  { %p445_p9 = pnand %p444_p8, %p438_p5 }
  0x14   :  { %448 = shalt.err (!%p445_p9)
}
  0x15   :  { %29 = dma.hbm_to_vmem [thread:$0]  %s685_s1, 512, %s27_s12, [#allocation6]  }
  0x16   :  { %469 = dma.done.wait [#allocation3], 512  }
  0x17   :  { %470 = vsyncadd [#allocation3], 4294966784 }
  0x18   :  { %471 = dma.done.wait [#allocation6], 512  }
  0x19   :  { %472 = vsyncadd [#allocation6], 4294966784  ;;  %v45_v0 = vld [vmem:[#allocation2 + $0x8] sm:$0xff]  ;;  %v44_v1 = vld [vmem:[#allocation2] sm:$0xff]  ;;  %s477_s19 = smov 126   ;;  %vm72_vm0 = vcmask 1031168  }
  0x1a   :  { %v46_v2 = vld [vmem:[#allocation2 + $0x10] sm:$0xff]  ;;  %126 = vrot.lane.b32.xlu1 %v45_v0, %s477_s19  ;;  %124 = vrot.lane.b32.xlu0 %v44_v1, %s477_s19  ;;  %v48_v4 = vld [vmem:[#allocation5] sm:$0xff]  ;;  %v47_v7 = vld [vmem:[#allocation2 + $0x18] sm:$0xff]  ;;  %s478_s0 = smov 127   ;;  %vm106_vm1 = vcmask 1039360   ;;  %s479_s1 = smov [#allocation7]  }
  0x1b   :  { %v501_v3 = vld [vmem:[#allocation5 + $0x10] sm:$0xff]  ;;  %v506_v6 = vmin.f32 %v44_v1, %v48_v4  ;;  %v508_v8 = vld [vmem:[#allocation5 + $0x18] sm:$0xff]  ;;  %v49_v9 = vld [vmem:[#allocation5 + $0x8] sm:$0xff]  ;;  %v523_v13 = vmax.f32 %v44_v1, %v48_v4  ;;  %s377_s20 = sshll.u32 %s479_s1, 4  ;;  %s378_s20 = int_to_ptr.vmem [resolvable:$true] %s377_s20 }
  0x1c   :  { %v504_v5 = vmin.f32 %v46_v2, %v501_v3  ;;  %v513_v10 = vmin.f32 %v47_v7, %v508_v8  ;;  %v515_v11 = vmin.f32 %v45_v0, %v49_v9  ;;  %v521_v12 = vmax.f32 %v45_v0, %v49_v9  ;;  %s449_s21 = scalar_lea.vmem %s378_s20, 512  ;;  %p454_p11 = scmp.lt.s32.totalorder %s378_s20, %s378_s20 }
  0x1d   :  { %v528_v14 = vmax.f32 %v47_v7, %v508_v8  ;;  %v531_v15 = vmax.f32 %v46_v2, %v501_v3  ;;  %p450_p10 = scmp.ne.s32.totalorder %s378_s20, %s449_s21  ;;  %p455_p12 = scmp.lt.s32.totalorder %s449_s21, %s449_s21 }
  0x1e   :  { %68 = vrot.lane.b32.xlu1 %v504_v5, %s477_s19  ;;  %64 = vrot.lane.b32.xlu0 %v506_v6, %s477_s19 }
  0x1f   :  { %p456_p13 = por %p455_p12, %p454_p11 }
  0x21   :  { %p457_p0 = pnand %p456_p13, %p450_p10 }
  0x22   :  { %70 = vrot.lane.b32.xlu1 %v513_v10, %s477_s19  ;;  %66 = vrot.lane.b32.xlu0 %v515_v11, %s477_s19 }
  0x26   :  { %130 = vrot.lane.b32.xlu1 %v47_v7, %s477_s19  ;;  %128 = vrot.lane.b32.xlu0 %v46_v2, %s477_s19 }
  0x2a   :  { %155 = vrot.lane.b32.xlu1 %v49_v9, %s477_s19  ;;  %153 = vrot.lane.b32.xlu0 %v48_v4, %s477_s19 }
  0x2e   :  { %159 = vrot.lane.b32.xlu1 %v508_v8, %s477_s19  ;;  %157 = vrot.lane.b32.xlu0 %v501_v3, %s477_s19 }
  0x32   :  { %242 = vrot.lane.b32.xlu1 %v521_v12, %s477_s19  ;;  %240 = vrot.lane.b32.xlu0 %v523_v13, %s477_s19 }
  0x36   :  { %246 = vrot.lane.b32.xlu1 %v528_v14, %s477_s19  ;;  %244 = vrot.lane.b32.xlu0 %v531_v15, %s477_s19 }
  0x8c   :  { %v127_v16 = vpop.permute.xlu1 %126  ;;  %v125_v17 = vpop.permute.xlu0 %124 }
  0x8d   :  { %v132_v18 = vsel %vm72_vm0, %v125_v17, %v127_v16 }
  0x8e   :  { %v141_v19 = vsub.f32 %v132_v18, %v44_v1 }
  0x90   :  { %v536_v20 = vadd.f32 1.0, %v141_v19  ;;  %v69_v21 = vpop.permute.xlu1 %68  ;;  %v65_v22 = vpop.permute.xlu0 %64 }
  0x92   :  { %182 = vrot.lane.b32.xlu0 %v536_v20, %s478_s0 }
  0x94   :  { %v71_v23 = vpop.permute.xlu1 %70  ;;  %v67_v24 = vpop.permute.xlu0 %66 }
  0x95   :  { %v73_v45 = vsel %vm72_vm0, %v65_v22, %v67_v24  ;;  %v75_v53 = vsel %vm72_vm0, %v69_v21, %v71_v23  ;;  %v74_v57 = vsel %vm72_vm0, %v67_v24, %v69_v21 }
  0x96   :  { %v82_v54 = vsub.f32 %v73_v45, %v523_v13  ;;  %v84_v59 = vsub.f32 %v75_v53, %v531_v15  ;;  %v83_v62 = vsub.f32 %v74_v57, %v521_v12 }
  0x98   :  { %v131_v25 = vpop.permute.xlu1 %130  ;;  %v129_v26 = vpop.permute.xlu0 %128  ;;  %v581_v63 = vadd.f32 1.0, %v82_v54 }
  0x99   :  { %v133_v27 = vsel %vm72_vm0, %v127_v16, %v129_v26  ;;  %v134_v28 = vsel %vm72_vm0, %v129_v26, %v131_v25  ;;  %v140_v29 = vsel %vm72_vm0, %v131_v25, %v125_v17 }
  0x9a   :  { %v142_v30 = vsub.f32 %v133_v27, %v45_v0  ;;  %v143_v31 = vsub.f32 %v134_v28, %v46_v2  ;;  %v144_v34 = vsub.f32 %v140_v29, %v47_v7  ;;  %v81_v2 = vsel %vm72_vm0, %v71_v23, %v65_v22 }
  0x9b   :  { %v85_v7 = vsub.f32 %v81_v2, %v528_v14  ;;  %v90_v12 = vmax.f32 %v581_v63, 0.0 }
  0x9c   :  { %v156_v32 = vpop.permute.xlu1 %155  ;;  %v154_v33 = vpop.permute.xlu0 %153  ;;  %v543_v35 = vadd.f32 1.0, %v142_v30  ;;  %v545_v36 = vadd.f32 1.0, %v143_v31  ;;  %v554_v42 = vadd.f32 1.0, %v144_v34 }
  0x9d   :  { %v161_v37 = vsel %vm72_vm0, %v154_v33, %v156_v32 }
  0x9e   :  { %v170_v38 = vsub.f32 %v161_v37, %v48_v4  ;;  %186 = vrot.lane.b32.xlu0 %v545_v36, %s478_s0  ;;  %184 = vrot.lane.b32.xlu1 %v543_v35, %s478_s0 }
  0xa0   :  { %v552_v39 = vadd.f32 1.0, %v170_v38  ;;  %v160_v40 = vpop.permute.xlu1 %159  ;;  %v158_v41 = vpop.permute.xlu0 %157 }
  0xa1   :  { %v162_v43 = vsel %vm72_vm0, %v156_v32, %v158_v41  ;;  %v163_v44 = vsel %vm72_vm0, %v158_v41, %v160_v40  ;;  %v169_v46 = vsel %vm72_vm0, %v160_v40, %v154_v33 }
  0xa2   :  { %v171_v47 = vsub.f32 %v162_v43, %v49_v9  ;;  %v172_v48 = vsub.f32 %v163_v44, %v501_v3  ;;  %188 = vrot.lane.b32.xlu1 %v554_v42, %s478_s0  ;;  %207 = vrot.lane.b32.xlu0 %v552_v39, %s478_s0  ;;  %v173_v55 = vsub.f32 %v169_v46, %v508_v8  ;;  %v591_v8 = vadd.f32 1.0, %v84_v59 }
  0xa3   :  { %v87_v9 = vadd.f32 1.0, %v83_v62 }
  0xa4   :  { %v565_v49 = vadd.f32 1.0, %v171_v47  ;;  %v567_v50 = vadd.f32 1.0, %v172_v48  ;;  %v243_v51 = vpop.permute.xlu1 %242  ;;  %v241_v52 = vpop.permute.xlu0 %240  ;;  %v177_v0 = vadd.f32 1.0, %v173_v55  ;;  %v92_v15 = vmax.f32 %v591_v8, 0.0 }
  0xa5   :  { %v248_v56 = vsel %vm72_vm0, %v241_v52, %v243_v51  ;;  %v91_v16 = vmax.f32 %v87_v9, 0.0 }
  0xa6   :  { %v257_v58 = vsub.f32 %v248_v56, %v506_v6  ;;  %211 = vrot.lane.b32.xlu0 %v567_v50, %s478_s0  ;;  %209 = vrot.lane.b32.xlu1 %v565_v49, %s478_s0 }
  0xa8   :  { %v261_v60 = vadd.f32 1.0, %v257_v58  ;;  %v245_v61 = vpop.permute.xlu0 %244  ;;  %v247_v4 = vpop.permute.xlu1 %246 }
  0xa9   :  { %v249_v1 = vsel %vm72_vm0, %v243_v51, %v245_v61  ;;  %v250_v13 = vsel %vm72_vm0, %v245_v61, %v247_v4  ;;  %v256_v14 = vsel %vm72_vm0, %v247_v4, %v241_v52 }
  0xaa   :  { %v258_v3 = vsub.f32 %v249_v1, %v515_v11  ;;  %213 = vrot.lane.b32.xlu1 %v177_v0, %s478_s0  ;;  %269 = vrot.lane.b32.xlu0 %v261_v60, %s478_s0  ;;  %v598_v11 = vadd.f32 1.0, %v85_v7  ;;  %v259_v17 = vsub.f32 %v250_v13, %v504_v5  ;;  %v260_v19 = vsub.f32 %v256_v14, %v513_v10 }
  0xac   :  { %v588_v6 = vadd.f32 1.0, %v258_v3  ;;  %v93_v18 = vmax.f32 %v598_v11, 0.0  ;;  %v607_v21 = vadd.f32 1.0, %v259_v17  ;;  %v612_v22 = vadd.f32 1.0, %v260_v19 }
  0xae   :  { %98 = vrot.lane.b32.xlu0 %v90_v12, %s478_s0  ;;  %271 = vrot.lane.b32.xlu1 %v588_v6, %s478_s0 }
  0xb2   :  { %102 = vrot.lane.b32.xlu0 %v92_v15, %s478_s0  ;;  %100 = vrot.lane.b32.xlu1 %v91_v16, %s478_s0 }
  0xb6   :  { %273 = vrot.lane.b32.xlu0 %v607_v21, %s478_s0  ;;  %104 = vrot.lane.b32.xlu1 %v93_v18, %s478_s0 }
  0xba   :  { %275 = vrot.lane.b32.xlu1 %v612_v22, %s478_s0 }
 0x104   :  { %v183_v5 = vpop.permute.xlu0 %182 }
 0x110   :  { %v185_v23 = vpop.permute.xlu1 %184  ;;  %v187_v24 = vpop.permute.xlu0 %186 }
 0x111   :  { %v190_v32 = vsel %vm106_vm1, %v183_v5, %v185_v23  ;;  %v191_v37 = vsel %vm106_vm1, %v185_v23, %v187_v24 }
 0x112   :  { %v199_v47 = vmul.f32 %v190_v32, %v536_v20  ;;  %v200_v48 = vmul.f32 %v191_v37, %v543_v35 }
 0x114   :  { %v189_v25 = vpop.permute.xlu1 %188  ;;  %v208_v26 = vpop.permute.xlu0 %207 }
 0x115   :  { %v192_v38 = vsel %vm106_vm1, %v187_v24, %v189_v25  ;;  %v198_v51 = vsel %vm106_vm1, %v189_v25, %v183_v5 }
 0x116   :  { %v201_v55 = vmul.f32 %v192_v38, %v545_v36  ;;  %v202_v35 = vmul.f32 %v198_v51, %v554_v42 }
 0x118   :  { %v210_v27 = vpop.permute.xlu1 %209  ;;  %v212_v28 = vpop.permute.xlu0 %211 }
 0x119   :  { %v215_v30 = vsel %vm106_vm1, %v208_v26, %v210_v27  ;;  %v216_v31 = vsel %vm106_vm1, %v210_v27, %v212_v28 }
 0x11a   :  { %v224_v43 = vmul.f32 %v215_v30, %v552_v39  ;;  %v225_v44 = vmul.f32 %v216_v31, %v565_v49 }
 0x11c   :  { %v214_v10 = vpop.permute.xlu1 %213  ;;  %v270_v29 = vpop.permute.xlu0 %269  ;;  %v228_v57 = vadd.f32 %v224_v43, %v199_v47  ;;  %v229_v58 = vadd.f32 %v225_v44, %v200_v48 }
 0x11d   :  { %v217_v40 = vsel %vm106_vm1, %v212_v28, %v214_v10  ;;  %v223_v45 = vsel %vm106_vm1, %v214_v10, %v208_v26 }
 0x11e   :  { %v226_v52 = vmul.f32 %v217_v40, %v567_v50  ;;  %v227_v56 = vmul.f32 %v223_v45, %v177_v0 }
 0x120   :  { %v272_v33 = vpop.permute.xlu1 %271  ;;  %v99_v34 = vpop.permute.xlu0 %98  ;;  %v231_v36 = vadd.f32 %v227_v56, %v202_v35 }
 0x121   :  { %v277_v41 = vsel %vm106_vm1, %v270_v29, %v272_v33 }
 0x122   :  { %v286_v46 = vmul.f32 %v277_v41, %v261_v60  ;;  %v230_v60 = vadd.f32 %v226_v52, %v201_v55 }
 0x124   :  { %393 = vrcp.f32 %v286_v46  ;;  %v101_v53 = vpop.permute.xlu1 %100  ;;  %v103_v54 = vpop.permute.xlu0 %102 }
 0x125   :  { %v107_v39 = vsel %vm106_vm1, %v99_v34, %v101_v53  ;;  %v108_v49 = vsel %vm106_vm1, %v101_v53, %v103_v54 }
 0x126   :  { %v116_v59 = vmul.f32 %v107_v39, %v90_v12  ;;  %v633_v20 = vmul.f32 %v108_v49, %v91_v16 }
 0x128   :  { %v232_v61 = vsub.f32 %v228_v57, %v116_v59  ;;  %v637_v50 = vsub.f32 %v229_v58, %v633_v20  ;;  %v105_v62 = vpop.permute.xlu1 %104  ;;  %v274_v63 = vpop.permute.xlu0 %273 }
 0x129   :  { %v109_v0 = vsel %vm106_vm1, %v103_v54, %v105_v62  ;;  %v115_v1 = vsel %vm106_vm1, %v105_v62, %v99_v34  ;;  %v278_v2 = vsel %vm106_vm1, %v272_v33, %v274_v63 }
 0x12a   :  { %395 = vrcp.f32 %v232_v61  ;;  %v642_v3 = vmul.f32 %v109_v0, %v92_v15  ;;  %v644_v4 = vmul.f32 %v115_v1, %v93_v18  ;;  %v287_v42 = vmul.f32 %v278_v2, %v588_v6 }
 0x12b   :  { %397 = vrcp.f32 %v637_v50  ;;  %v338_v15 = vlaneseq }
 0x12c   :  { %v649_v7 = vsub.f32 %v230_v60, %v642_v3  ;;  %v652_v8 = vsub.f32 %v231_v36, %v644_v4  ;;  %399 = vrcp.f32 %v287_v42  ;;  %v276_v9 = vpop.permute.xlu1 %275 }
 0x12d   :  { %v279_v12 = vsel %vm106_vm1, %v274_v63, %v276_v9  ;;  %v285_v13 = vsel %vm106_vm1, %v276_v9, %v270_v29  ;;  %v339_v14 = vand.u32 127, %v338_v15 }
 0x12e   :  { %401 = vrcp.f32 %v649_v7  ;;  %v288_v11 = vmul.f32 %v279_v12, %v607_v21  ;;  %v289_v6 = vmul.f32 %v285_v13, %v612_v22 }
 0x12f   :  { %403 = vrcp.f32 %v652_v8  ;;  %v343_v5 = vand.u32 3, %v339_v14  ;;  %v340_v25 = vadd.s32 128, %v339_v14  ;;  %v341_v21 = vadd.s32 256, %v339_v14 }
 0x130   :  { %405 = vrcp.f32 %v288_v11  ;;  %v342_v44 = vadd.s32 384, %v339_v14 }
 0x131   :  { %v394_v16 = vpop.eup %393  ;;  %407 = vrcp.f32 %v289_v6  ;;  %vm661_vm2 = vcmp.eq.s32.totalorder %v343_v5, 0  ;;  %v344_v37 = vand.u32 3, %v340_v25  ;;  %v345_v45 = vand.u32 3, %v341_v21 }
 0x132   :  { %v318_v17 = vmul.f32 %v394_v16, %v286_v46 }
 0x133   :  { %vm669_vm3 = vcmp.eq.s32.totalorder %v344_v37, 0  ;;  %vm349_vm4 = vcmp.eq.s32.totalorder %v345_v45, 0 }
 0x134   :  { %v322_v19 = vsub.f32 2.0, %v318_v17 }
 0x136   :  { %v326_v29 = vmul.f32 %v394_v16, %v322_v19 }
 0x137   :  { %v396_v18 = vpop.eup %395 }
 0x138   :  { %v398_v23 = vpop.eup %397  ;;  %v294_v24 = vmul.f32 %v396_v18, %v232_v61  ;;  %v330_v53 = vmul.f32 %v326_v29, %v232_v61  ;;  %v346_v61 = vand.u32 3, %v342_v44 }
 0x139   :  { %v400_v26 = vpop.eup %399  ;;  %v295_v27 = vmul.f32 %v398_v23, %v637_v50 }
 0x13a   :  { %v298_v28 = vsub.f32 2.0, %v294_v24  ;;  %v319_v22 = vmul.f32 %v400_v26, %v287_v42  ;;  %vm350_vm5 = vcmp.eq.s32.totalorder %v346_v61, 0 }
 0x13b   :  { %v402_v10 = vpop.eup %401  ;;  %v299_v31 = vsub.f32 2.0, %v295_v27 }
 0x13c   :  { %v404_v32 = vpop.eup %403  ;;  %v302_v33 = vmul.f32 %v396_v18, %v298_v28  ;;  %v296_v34 = vmul.f32 %v402_v10, %v649_v7  ;;  %v323_v38 = vsub.f32 2.0, %v319_v22 }
 0x13d   :  { %v406_v40 = vpop.eup %405  ;;  %v303_v41 = vmul.f32 %v398_v23, %v299_v31  ;;  %v297_v43 = vmul.f32 %v404_v32, %v652_v8 }
 0x13e   :  { %v408_v46 = vpop.eup %407  ;;  %v306_v47 = vmul.f32 %v302_v33, %v116_v59  ;;  %v300_v48 = vsub.f32 2.0, %v296_v34  ;;  %v327_v51 = vmul.f32 %v400_v26, %v323_v38  ;;  %v320_v52 = vmul.f32 %v406_v40, %v288_v11 }
 0x13f   :  { %v307_v54 = vmul.f32 %v303_v41, %v633_v20  ;;  %v301_v55 = vsub.f32 2.0, %v297_v43  ;;  %v321_v56 = vmul.f32 %v408_v46, %v289_v6 }
 0x140   :  { %v310_v39 = vsub.f32 2.0, %v306_v47  ;;  %v304_v49 = vmul.f32 %v402_v10, %v300_v48  ;;  %v331_v57 = vmul.f32 %v327_v51, %v637_v50  ;;  %v324_v58 = vsub.f32 2.0, %v320_v52 }
 0x141   :  { %v311_v35 = vsub.f32 2.0, %v307_v54  ;;  %v305_v60 = vmul.f32 %v404_v32, %v301_v55  ;;  %v325_v59 = vsub.f32 2.0, %v321_v56 }
 0x142   :  { %v334_v63 = vsub.f32 %v310_v39, %v330_v53  ;;  %v308_v36 = vmul.f32 %v304_v49, %v642_v3  ;;  %v328_v0 = vmul.f32 %v406_v40, %v324_v58 }
 0x143   :  { %v309_v20 = vmul.f32 %v305_v60, %v644_v4  ;;  %v335_v1 = vsub.f32 %v311_v35, %v331_v57  ;;  %v329_v2 = vmul.f32 %v408_v46, %v325_v59 }
 0x144   :  { %v351_v50 = vsel %vm661_vm2, %v334_v63, 0.0  ;;  %v312_v42 = vsub.f32 2.0, %v308_v36  ;;  %v332_v9 = vmul.f32 %v328_v0, %v649_v7 }
 0x145   :  { %v313_v12 = vsub.f32 2.0, %v309_v20  ;;  %v352_v13 = vsel %vm669_vm3, %v335_v1, 0.0  ;;  %v333_v11 = vmul.f32 %v329_v2, %v652_v8  ;;  %367 = vst [vmem:[#allocation7] sm:$0xff] %v351_v50 }
 0x146   :  { %v336_v3 = vsub.f32 %v312_v42, %v332_v9  ;;  %368 = vst [vmem:[#allocation7 + $0x8] sm:$0xff] %v352_v13 }
 0x147   :  { %v337_v6 = vsub.f32 %v313_v12, %v333_v11 }
 0x148   :  { %v353_v4 = vsel %vm349_vm4, %v336_v3, 0.0 }
 0x149   :  { %v354_v15 = vsel %vm350_vm5, %v337_v6, 0.0  ;;  %369 = vst [vmem:[#allocation7 + $0x10] sm:$0xff] %v353_v4 }
 0x14a   :  { %370 = vst [vmem:[#allocation7 + $0x18] sm:$0xff] %v354_v15 }
 0x14b   :  { %460 = shalt.err (!%p457_p0)
}
 0x14c   :  { %380 = dma.vmem_to_hbm [thread:$0]  %s378_s20, 512, %s686_s2, [#allocation4]  }
 0x14d   :  { %473 = dma.done.wait [#allocation4], 512  }
 0x14e   :  { %474 = vsyncadd [#allocation4], 4294966784 }
 0x14f   :  { %384 = vsyncpa [#allocation3], 1 }
 0x150   :  { %385 = vsyncpa [#allocation6], 1 }
 0x151   :  { %386 = vsyncpa [#allocation4], 1 }

</bundles_post_ra>
